<compile_context>
chip_gen: v5e
topology: v5e:2x2
jax: 0.10.0
libtpu: 0.0.40
codegen_flags: <defaults>
</compile_context>

<pallas_src>
import math

import jax
import jax.numpy as jnp
from jax.experimental import pallas as pl
from jax.experimental.pallas import tpu as pltpu


def _round_up(v, m):
    return ((v + m - 1) // m) * m


def build_normalized_adjacency_padded(edge_index, num_nodes, n_rows, n_cols,
                                      improved=True, out_dtype=jnp.bfloat16):
    """Normalized adjacency, built in ONE scatter pass directly at the padded
    shape and in the kernel's streaming dtype (matches GCNConv.forward)."""
    row, col = edge_index[0], edge_index[1]
    e = row.shape[0]
    f32 = jnp.float32
    edge_weight = jnp.ones((e,), dtype=f32)

    # add self loops with weight 2 (improved=True) / 1
    loop_val = 2.0 if improved else 1.0
    loop_idx = jnp.arange(num_nodes, dtype=row.dtype)
    row = jnp.concatenate([row, loop_idx])
    col = jnp.concatenate([col, loop_idx])
    edge_weight = jnp.concatenate(
        [edge_weight, jnp.full((num_nodes,), loop_val, dtype=f32)])

    # deg = scatter_add(edge_weight, row)  (VGRNN GCNConv scatters over row)
    deg = jnp.zeros((num_nodes,), dtype=f32).at[row].add(edge_weight)
    deg_inv = deg ** -0.5
    deg_inv = jnp.where(jnp.isinf(deg_inv), 0.0, deg_inv)
    norm = deg_inv[row] * edge_weight * deg_inv[col]

    # densify straight into the padded, kernel-dtype buffer
    a_p = jnp.zeros((n_rows, n_cols), out_dtype)
    a_p = a_p.at[row, col].add(norm.astype(out_dtype))
    return a_p


def _make_gcn_kernel(tk, xw_resident):
    """Tiled A_hat @ XW with fused ReLU; accumulates directly into o_ref."""

    def kernel(a_ref, xw_ref, o_ref):
        # grid = (row_tiles, k_tiles); axis 1 is the reduction ("arbitrary").
        k = pl.program_id(1)

        @pl.when(k == 0)
        def _():
            o_ref[...] = jnp.zeros_like(o_ref)

        if xw_resident:
            # XW is fully resident in VMEM; take the K-slice for this step.
            start = pl.multiple_of(k * tk, tk)
            xw = xw_ref[pl.ds(start, tk), :]
        else:
            xw = xw_ref[...]

        o_ref[...] += jnp.dot(a_ref[...], xw,
                              preferred_element_type=jnp.float32)

        @pl.when(k == pl.num_programs(1) - 1)
        def _():
            o_ref[...] = jnp.maximum(o_ref[...], 0.0)

    return kernel


def gcn_conv_pallas(x, edge_index, w, *, improved=True, tm=512, tk=2048):
    """relu(A_hat @ (x @ w)) with the A@XW matmul as a tiled Pallas kernel."""
    n = x.shape[0]
    fout = w.shape[1]

    # --- tile selection -----------------------------------------------------
    # tm: multiple of 16 (bf16 sublane packing); make sure the parallel row
    # axis has >= 2 tiles so v7x's two TensorCores both get work.
    tm = min(tm, _round_up(n, 16))
    if _round_up(n, tm) // tm < 2 and n > 16:
        tm = _round_up(-(-n // 2), 16)
    tk = min(tk, _round_up(n, 128))

    n_rows = _round_up(n, tm)        # padded A row dim
    n_cols = _round_up(n, tk)        # padded contraction dim (A cols / XW rows)
    fout_p = _round_up(fout, 128)    # lane-dense output width
    m_tiles = n_rows // tm
    k_tiles = n_cols // tk

    # Keep XW resident in VMEM when it is small (avoids re-streaming it once
    # per row tile on the HBM-bound kernel).
    xw_bytes_full = n_cols * fout_p * 2
    xw_resident = xw_bytes_full <= (4 << 20)

    # --- operand build (no redundant N^2 passes) ----------------------------
    a_p = build_normalized_adjacency_padded(
        edge_index, n, n_rows, n_cols, improved=improved,
        out_dtype=jnp.bfloat16)

    xw = jnp.dot(x.astype(jnp.float32), w.astype(jnp.float32))  # cheap; hoisted
    xw_p = jnp.zeros((n_cols, fout_p), jnp.bfloat16).at[:n, :fout].set(
        xw.astype(jnp.bfloat16))

    # --- specs ---------------------------------------------------------------
    if xw_resident:
        xw_spec = pl.BlockSpec((n_cols, fout_p), lambda i, k: (0, 0))
        xw_buf_bytes = 2 * xw_bytes_full
        xw_hbm_bytes = xw_bytes_full
    else:
        xw_spec = pl.BlockSpec((tk, fout_p), lambda i, k: (k, 0))
        xw_buf_bytes = 2 * tk * fout_p * 2
        xw_hbm_bytes = m_tiles * n_cols * fout_p * 2

    ws_bytes = (2 * tm * tk * 2          # A double buffer (bf16)
                + xw_buf_bytes           # XW buffers (bf16)
                + 2 * tm * fout_p * 4)   # output double buffer (f32)
    vmem_limit = int(min(max(2 * ws_bytes, 16 << 20), 48 << 20))

    cost = pl.CostEstimate(
        flops=2 * n_rows * n_cols * fout_p,
        transcendentals=0,
        bytes_accessed=(n_rows * n_cols * 2 + xw_hbm_bytes
                        + n_rows * fout_p * 4))

    out_p = pl.pallas_call(
        _make_gcn_kernel(tk, xw_resident),
        out_shape=jax.ShapeDtypeStruct((n_rows, fout_p), jnp.float32),
        grid_spec=pltpu.PrefetchScalarGridSpec(
            num_scalar_prefetch=0,
            grid=(m_tiles, k_tiles),
            in_specs=[
                pl.BlockSpec((tm, tk), lambda i, k: (i, k)),
                xw_spec,
            ],
            out_specs=pl.BlockSpec((tm, fout_p), lambda i, k: (i, 0)),
        ),
        compiler_params=pltpu.CompilerParams(
            dimension_semantics=("parallel", "arbitrary"),
            vmem_limit_bytes=vmem_limit),
        cost_estimate=cost,
    )(a_p, xw_p)

    return out_p[:n, :fout]


# ----------------------------- references -----------------------------------
def gcn_conv_reference_f32(edge_index, x, w, improved=True):
    a_hat = build_normalized_adjacency_padded(
        edge_index, x.shape[0], x.shape[0], x.shape[0],
        improved=improved, out_dtype=jnp.float32)
    return jnp.maximum(a_hat @ (x @ w), 0.0)


def gcn_conv_reference_bf16(edge_index, x, w, n_rows, n_cols, improved=True):
    # Same bf16-rounded operands as the kernel streams, f32 math.
    n, fout = x.shape[0], w.shape[1]
    a_bf = build_normalized_adjacency_padded(
        edge_index, n, n_rows, n_cols, improved=improved,
        out_dtype=jnp.bfloat16)[:n, :n].astype(jnp.float32)
    xw_bf = (x @ w).astype(jnp.bfloat16).astype(jnp.float32)
    return jnp.maximum(a_bf @ xw_bf, 0.0)


if __name__ == "__main__":
    key = jax.random.PRNGKey(0)
    k_x, k_w, k_e = jax.random.split(key, 3)

    N = 32          # number of nodes
    F_IN = 16       # in_channels
    F_OUT = 32      # out_channels
    E = 64          # number of (directed) edges

    # deterministic node features
    x = jax.random.normal(k_x, (N, F_IN), dtype=jnp.float32)

    # glorot-uniform weight init (matches glorot() in the PyTorch module)
    stdv = math.sqrt(6.0 / (F_IN + F_OUT))
    w = jax.random.uniform(k_w, (F_IN, F_OUT), minval=-stdv, maxval=stdv,
                           dtype=jnp.float32)

    # deterministic random edge list [2, E]
    edge_index = jax.random.randint(k_e, (2, E), 0, N, dtype=jnp.int32)

    out = gcn_conv_pallas(x, edge_index, w, improved=True)
    out = jax.block_until_ready(out)
    assert out.shape == (N, F_OUT)

    # Tight check vs. a reference built from the same bf16-rounded operands
    # (same padded-shape scatter construction as the kernel path).
    ref_bf16 = gcn_conv_reference_bf16(edge_index, x, w,
                                       n_rows=_round_up(N, 16),
                                       n_cols=_round_up(N, 128))
    assert jnp.allclose(out, ref_bf16, atol=1e-2, rtol=1e-2), \
        "mismatch vs bf16-rounded reference"

    # Sanity check vs. the pure-f32 reference (bf16 streams cost ~1e-2 rel).
    ref_f32 = gcn_conv_reference_f32(edge_index, x, w, improved=True)
    assert jnp.allclose(out, ref_f32, atol=5e-2, rtol=5e-2), \
        "mismatch vs f32 reference"

    print("KERNEL_OK")
</pallas_src>

<mosaic_0001>
module attributes {stable_mosaic.version = 11 : i64} {
  func.func @kernel(%arg0: i32, %arg1: i32, %arg2: memref<16x128xbf16, #tpu.memory_space<vmem>>, %arg3: memref<128x128xbf16, #tpu.memory_space<vmem>>, %arg4: memref<16x128xf32, #tpu.memory_space<vmem>>) attributes {dimension_semantics = [#tpu.dimension_semantics<parallel>, #tpu.dimension_semantics<arbitrary>], iteration_bounds = array<i64: 2, 1>, scalar_prefetch = 0 : i64, scratch_operands = 0 : i64, tpu.core_type = #tpu.core_type<tc>, window_params = [{transform_indices = @transform_0, window_bounds = array<i64: 16, 128>}, {pipeline_mode = #tpu.pipeline_mode<synchronous>, transform_indices = @transform_1, window_bounds = array<i64: 128, 128>}, {transform_indices = @transform_2, window_bounds = array<i64: 16, 128>}]} {
    %c0_i32 = arith.constant 0 : i32
    %0 = arith.cmpi eq, %arg1, %c0_i32 : i32
    %1 = arith.extui %0 : i1 to i32
    %c0_i32_0 = arith.constant 0 : i32
    %2 = arith.cmpi ne, %1, %c0_i32_0 : i32
    scf.if %2 {
      %cst_9 = arith.constant 0.000000e+00 : f32
      %15 = vector.broadcast %cst_9 : f32 to vector<16x128xf32>
      %c0_10 = arith.constant 0 : index
      %c0_11 = arith.constant 0 : index
      %16 = vector.load %arg4[%c0_10, %c0_11] : memref<16x128xf32, #tpu.memory_space<vmem>>, vector<16x128xf32>
      tpu.vector_store %arg4[%c0_10, %c0_11], %15 {strides = array<i32>} : memref<16x128xf32, #tpu.memory_space<vmem>>, vector<16x128xf32>,
    } else {
    }
    %c128_i32 = arith.constant 128 : i32
    %3 = arith.muli %arg1, %c128_i32 : i32
    %4 = tpu.assume_multiple %3, 128 : i32
    %5 = arith.index_cast %4 : i32 to index
    %c0 = arith.constant 0 : index
    %6 = vector.load %arg3[%5, %c0] : memref<128x128xbf16, #tpu.memory_space<vmem>>, vector<128x128xbf16>
    %c0_1 = arith.constant 0 : index
    %c0_2 = arith.constant 0 : index
    %7 = vector.load %arg4[%c0_1, %c0_2] : memref<16x128xf32, #tpu.memory_space<vmem>>, vector<16x128xf32>
    %c0_3 = arith.constant 0 : index
    %c0_4 = arith.constant 0 : index
    %8 = vector.load %arg2[%c0_3, %c0_4] : memref<16x128xbf16, #tpu.memory_space<vmem>>, vector<16x128xbf16>
    %cst = arith.constant dense<0.000000e+00> : vector<16x128xf32>
    %9 = tpu.matmul %8, %6, %cst {dimension_numbers = #tpu.dot_dimension_numbers<[1], [0], [0], [1], [0, 0, 1, 1], [], []>} : vector<16x128xbf16>, vector<128x128xbf16>, vector<16x128xf32> -> vector<16x128xf32>
    %10 = arith.addf %7, %9 : vector<16x128xf32>
    %c0_5 = arith.constant 0 : index
    %c0_6 = arith.constant 0 : index
    %11 = vector.load %arg4[%c0_5, %c0_6] : memref<16x128xf32, #tpu.memory_space<vmem>>, vector<16x128xf32>
    tpu.vector_store %arg4[%c0_5, %c0_6], %10 {strides = array<i32>} : memref<16x128xf32, #tpu.memory_space<vmem>>, vector<16x128xf32>,
    %c0_i32_7 = arith.constant 0 : i32
    %12 = arith.cmpi eq, %arg1, %c0_i32_7 : i32
    %13 = arith.extui %12 : i1 to i32
    %c0_i32_8 = arith.constant 0 : i32
    %14 = arith.cmpi ne, %13, %c0_i32_8 : i32
    scf.if %14 {
      %c0_9 = arith.constant 0 : index
      %c0_10 = arith.constant 0 : index
      %15 = vector.load %arg4[%c0_9, %c0_10] : memref<16x128xf32, #tpu.memory_space<vmem>>, vector<16x128xf32>
      %cst_11 = arith.constant 0.000000e+00 : f32
      %16 = vector.broadcast %cst_11 : f32 to vector<16x128xf32>
      %17 = arith.maximumf %15, %16 : vector<16x128xf32>
      %c0_12 = arith.constant 0 : index
      %c0_13 = arith.constant 0 : index
      %18 = vector.load %arg4[%c0_12, %c0_13] : memref<16x128xf32, #tpu.memory_space<vmem>>, vector<16x128xf32>
      tpu.vector_store %arg4[%c0_12, %c0_13], %17 {strides = array<i32>} : memref<16x128xf32, #tpu.memory_space<vmem>>, vector<16x128xf32>,
    } else {
    }
    return
  }
  func.func @transform_0(%arg0: i32, %arg1: i32) -> (i32, i32) {
    %c0_i32 = arith.constant 0 : i32
    return %arg0, %arg1 : i32, i32
  }
  func.func @transform_1(%arg0: i32, %arg1: i32) -> (i32, i32) {
    %c0_i32 = arith.constant 0 : i32
    %c0_i32_0 = arith.constant 0 : i32
    %c0_i32_1 = arith.constant 0 : i32
    return %c0_i32, %c0_i32_0 : i32, i32
  }
  func.func @transform_2(%arg0: i32, %arg1: i32) -> (i32, i32) {
    %c0_i32 = arith.constant 0 : i32
    %c0_i32_0 = arith.constant 0 : i32
    return %arg0, %c0_i32 : i32, i32
  }
}

</mosaic_0001>

<bundles_post_ra>
// kernel: tpu_custom_call.1
= control target key start
LH: loop header
LB: loop body
LE: loop exit
PB: predicated region body
PF: predicated region fallthrough
CT: control target
= control target key end

     0   :  { %7 = vsyncpa [#allocation3], 0  ;;  %s887_s0 = inlined_call_operand.hbm [shape: bf16[32,128], index: 0, kind: input, shape index: {}]   ;;  %s888_s1 = inlined_call_operand.hbm [shape: bf16[128,128], index: 1, kind: input, shape index: {}]   ;;  %s889_s2 = inlined_call_operand.hbm [shape: f32[32,128], index: 2, kind: output, shape index: {}]  }
   0x1   :  { %9 = vsyncpa [#allocation3 + $0x1], 0 }
   0x2   :  { %10 = vsyncpa [#allocation6], 0 }
   0x3   :  { %11 = vsyncpa [#allocation4], 0 }
   0x4   :  { %13 = vsyncpa [#allocation4 + $0x1], 0  ;;  %s731_s9 = smov 0   ;;  %s733_s10 = smov 0  }
   0x5   :  { %s735_s11 = smov 0   ;;  %s737_s12 = smov 0  }
   0x6   :  { %s739_s13 = smov 0   ;;  %s741_s14 = smov 0  }
   0x7 LB: > { %s421_s15 = sadd.s32 4294967295, %s709_s14   ;;  %s422_s16 = sadd.s32 4294967294, %s709_s14   ;;  %s709_s14 = sphi %s741_s14, %s19_s14   ;;  %s705_s13 = sphi %s739_s13, %s901_s13   ;;  %s701_s12 = sphi %s737_s12, %s900_s12   ;;  %s697_s11 = sphi %s735_s11, %s899_s11   ;;  %s693_s10 = sphi %s733_s10, %s898_s10   ;;  %s689_s9 = sphi %s731_s9, %s897_s9  }
   0x8   : > { %p53_p0 = scmp.ne.s32.totalorder %s693_s10, %s689_s9  ;;  %p765_p1 = scmp.eq.s32.totalorder %s421_s15, 0 }
   0x9   : > { %p769_p2 = scmp.eq.s32.totalorder %s421_s15, 1  ;;  %p104_p3 = scmp.eq.s32.totalorder %s422_s16, 1 }
   0xa   : > { %p775_p4 = por %p765_p1, %p53_p0  ;;  %p423_p5 = scmp.ge.s32.totalorder %s709_s14, 1 }
   0xb   : > { %p780_p6 = por %p104_p3, %p53_p0  ;;  %p111_p7 = scmp.lt.s32.totalorder %s709_s14, 3 }
   0xc   : > { %s122_s23 = sshll.u32 %s888_s1, 4  ;;  %s711_s25 = smov [#allocation5]   ;;  %s123_s23 = int_to_ptr.hbm [resolvable:$true] %s122_s23 }
   0xd   : > { %p788_p8 = pnand %p423_p5, %p111_p7  ;;  %s124_s26 = sshll.u32 %s711_s25, 4  ;;  %s125_s26 = int_to_ptr.vmem [resolvable:$true] %s124_s26 }
   0xe   : > { %p425_p11 = scmp.ge.s32.totalorder %s709_s14, 2  ;;  %s712_s27 = smov 64  }
   0xf   : > { %p493_p9 = pneg %p788_p8  ;;  %s713_s28 = smov 4  }
  0x10   : > { %s31_s29 = sadd.s32 1, %s705_s13  ;;  %s40_s30 = sadd.s32 1, %s697_s11 }
  0x11   : > { %p494_p10 = pnand %p493_p9, %p765_p1  ;;  %p33_p12 = scmp.ge.s32.totalorder %s31_s29, 2 }
  0x12   : > { %p47_p13 = scmp.ne.s32.totalorder %s697_s11, %s693_s10  ;;  %p48_p0 = scmp.eq.s32.totalorder %s709_s14, 0 }
  0x13   : > { %496 = dma.hbm_to_vmem [thread:$0]  (!%p494_p10), %s123_s23, 1024, %s125_s26, [#allocation6], %s712_s27, %s712_s27, %s713_s28  }
  0x14   : > { %s903_s29 = smov (%p33_p12, %s31_s29), 0  ;;  %p807_p3 = por %p48_p0, %p47_p13 }
  0x15   : > { %p813_p5 = por %p769_p2, %p47_p13  ;;  %s35_s5 = ssub.s32 %s705_s13, %s903_s29 }
  0x16   : > { %p506_p7 = scmp.lt.s32.totalorder %s709_s14, 2  ;;  %p38_p9 = scmp.eq.s32.totalorder %s35_s5, 0 }
  0x17   : > { %s138_s6 = sand.u32 1, %s697_s11   ;;  %s474_s15 = sshll.u32 %s705_s13, 3 }
  0x18   : > { %s426_s7 = sshll.u32 %s138_s6, 3  ;;  %s148_s22 = scalar_lea.hbm %s887_s0, %s474_s15 }
  0x19   : > { %s822_s8 = scalar_select %p38_p9, %s697_s11, %s40_s30  }
  0x1a   : > { %s142_s23 = scalar_lea.vmem [#allocation2], %s426_s7  ;;  %s149_s18 = sshll.u32 %s148_s22, 4  ;;  %s150_s18 = int_to_ptr.hbm [resolvable:$true] %s149_s18 }
  0x1b   : > { %s151_s25 = sshll.u32 %s142_s23, 4  ;;  %p498_p2 = pnand %p506_p7, %p807_p3  ;;  %s152_s25 = int_to_ptr.vmem [resolvable:$true] %s151_s25 }
  0x1c   : > { %s139_s26 = scalar_lea.sflag [#allocation3], %s138_s6  ;;  %163 = sbr.rel (%p788_p8) target bundleno = 208 (0xd0), region = 28 }
  0x1d   : > { %500 = dma.hbm_to_vmem [thread:$0]  (!%p498_p2), %s150_s18, 128, %s152_s25, %s139_s26, %s712_s27, %s712_s27, %s713_s28  }
  0x1e   : > { %s836_s30 = sand.u32 (!%p788_p8), 1, %s693_s10  }
  0x1f   : > { %s430_s5 = sshll.u32 (!%p788_p8), %s836_s30, 3  ;;  %s166_s7 = scalar_lea.sflag (!%p788_p8), [#allocation3], %s836_s30 }
  0x20   : > { %s169_s15 = scalar_lea.vmem (!%p788_p8), [#allocation2], %s430_s5 }
  0x21   : > { %676 = dma.done.wait (%p775_p4), %s166_s7, 128  }
  0x22   : > { %678 = vsyncadd (%p775_p4), %s166_s7, 4294967168 }
  0x23   : > { %680 = dma.done.wait (%p765_p1), [#allocation6], 1024  }
  0x24   : > { %682 = vsyncadd (%p765_p1), [#allocation6], 4294966272  ;;  %v482_v0 = vld [vmem:[#allocation5 + $0x38] sm:$0xff]  ;;  %v481_v1 = vld [vmem:[#allocation5 + $0x30] sm:$0xff]  ;;  %s432_s17 = sshll.u32 %s836_s30, 4  ;;  %s484_s19 = sshll.u32 %s701_s12, 4 }
  0x25   : > { %283 = vmatpush.bf16.msra.mxu0 %v482_v0  ;;  %v480_v2 = vld [vmem:[#allocation5 + $0x28] sm:$0xff]  ;;  %v479_v3 = vld [vmem:[#allocation5 + $0x20] sm:$0xff]  ;;  %v478_v4 = vld [vmem:[#allocation5 + $0x18] sm:$0xff]  ;;  %s322_s28 = scalar_lea.hbm %s889_s2, %s484_s19  ;;  %s195_s3 = scalar_lea.vmem [#allocation7], %s432_s17 }
  0x26   : > { %v477_v5 = vld [vmem:[#allocation5 + $0x10] sm:$0xff]  ;;  %v476_v6 = vld [vmem:[#allocation5 + $0x8] sm:$0xff]  ;;  %v475_v7 = vld [vmem:[#allocation5] sm:$0xff]  ;;  %s323_s6 = sshll.u32 %s195_s3, 4  ;;  %s325_s16 = sshll.u32 %s322_s28, 4  ;;  %s324_s6 = int_to_ptr.vmem [resolvable:$true] %s323_s6  ;;  %s326_s16 = int_to_ptr.hbm [resolvable:$true] %s325_s16 }
  0x27   : > { %v483_v8 = vld [vmem:[%s169_s15] sm:$0xff]  ;;  %s311_s21 = scalar_lea.sflag [#allocation4], %s836_s30  ;;  %s637_s22 = sshra.s32 %s326_s16, 4  ;;  %s638_s22 = int_to_ptr.hbm [resolvable:$true] %s637_s22 }
  0x28   : > { %s639_s23 = scalar_lea.hbm %s638_s22, 16  ;;  %s643_s18 = scalar_lea.hbm %s889_s2, 32 }
  0x29   : > { %284 = vmatpush.bf16.msra.mxu0 %v481_v1  ;;  %p640_p1 = scmp.ne.s32.totalorder %s638_s22, %s639_s23  ;;  %p644_p10 = scmp.lt.s32.totalorder %s638_s22, %s889_s2 }
  0x2a   : > { %p645_p12 = scmp.lt.s32.totalorder %s643_s18, %s639_s23 }
  0x2b   : > { %p641_p4 = pnand %p640_p1, %p813_p5 }
  0x2c   : > { %p646_p13 = por %p645_p12, %p644_p10 }
  0x2d   : > { %285 = vmatpush.bf16.msra.mxu0 %v480_v2  ;;  %p642_p8 = pneg %p641_p4 }
  0x2f   : > { %p647_p0 = pnand %p646_p13, %p642_p8 }
  0x31   : > { %286 = vmatpush.bf16.msra.mxu0 %v479_v3 }
  0x35   : > { %287 = vmatpush.bf16.msra.mxu0 %v478_v4 }
  0x39   : > { %288 = vmatpush.bf16.msra.mxu0 %v477_v5 }
  0x3d   : > { %289 = vmatpush.bf16.msra.mxu0 %v476_v6 }
  0x41   : > { %290 = vmatpush.bf16.msra.mxu0 %v475_v7 }
  0x44   : > { %291 = vmatmul.bf16.vlgmr.msra.gmra.mxu0 %v483_v8 }
  0xc1   : > { %v292_v9 = vpop.f32.mrf.mxu0 }
  0xc2   : > { %v306_v10 = vmax.f32 %v292_v9, 0.0 }
  0xc4   : > { %308 = vst [vmem:[%s195_s3] sm:$0xff] %v306_v10 }
  0xc9   : > { %v294_v11 = vpop.f32.mrf.mxu0 }
  0xca   : > { %v307_v12 = vmax.f32 %v294_v11, 0.0 }
  0xcc   : > { %309 = vst [vmem:[%s195_s3 + $0x8] sm:$0xff] %v307_v12 }
  0xcd   : > { %650 = shalt.err (!%p647_p0)
}
  0xce   : > { %s714_s30 = smov 128   ;;  %s715_s7 = smov 8  }
  0xcf   : > { %491 = dma.vmem_to_hbm [thread:$0]  (%p813_p5), %s324_s6, 256, %s326_s16, %s311_s21, %s714_s30, %s714_s30, %s715_s7  }
  0xd0 PF: > { %s340_s15 = sand.u32 1, %s689_s9   ;;  %p502_p3 = pnand %p425_p11, %p780_p6 }
  0xd1   : > { %s341_s17 = scalar_lea.sflag [#allocation4], %s340_s15 }
  0xd2   : > { %p503_p7 = pneg %p502_p3 }
  0xd4   : > { %684 = dma.done.wait (%p503_p7), %s341_s17, 256  }
  0xd5   : > { %686 = vsyncadd (%p503_p7), %s341_s17, 4294967040  ;;  %s19_s14 = sadd.s32 1, %s709_s14   ;;  %s897_s9 = smov %s693_s10 }
  0xd6   : > { %p16_p9 = scmp.ge.s32.totalorder %s19_s14, 4   ;;  %s898_s10 = smov %s697_s11 }
  0xd7   : > { %s899_s11 = smov %s822_s8  ;;  %s900_s12 = smov %s705_s13 }
  0xd8   : > { %s901_s13 = smov %s903_s29  ;;  %18 = sbr.rel (!%p16_p9) target bundleno = 7 (0x7), region = 86 }
  0xdd   :  { %347 = vsyncpa [#allocation3], 1 }
  0xde   :  { %349 = vsyncpa [#allocation3 + $0x1], 1 }
  0xdf   :  { %350 = vsyncpa [#allocation6], 1 }
  0xe0   :  { %351 = vsyncpa [#allocation4], 1 }
  0xe1   :  { %353 = vsyncpa [#allocation4 + $0x1], 1 }

</bundles_post_ra>
